<compile_context>
chip_gen: v6e
topology: v6e:2x2x1
jax: 0.10.0
libtpu: 0.0.40
codegen_flags: <defaults>
</compile_context>

<pallas_src>
import jax
import jax.numpy as jnp
from jax.experimental import pallas as pl
from jax.experimental.pallas import tpu as pltpu

INPUT_DIM = 784
HIDDEN_DIM = 128
OUTPUT_DIM = 10
LEAKY_SLOPE = 0.01

N_PAD = 128                  # fc2 output padded 10 -> 128: lane-dense, unmasked stores
_SMALL_B = 128               # below this, a single tile (latency path)
_VMEM_BUDGET = 36 << 20      # buffer budget; safe inside v7x's 64 MiB per-TC VMEM
_VMEM_LIMIT_CAP = 48 << 20


def _round_up(x, m):
    return (x + m - 1) // m * m


def _mlp_kernel(x_ref, w1_ref, b1_ref, w2_ref, b2_ref, o_ref):
    # In-kernel downcast (no-op on the f32 path): x stays f32 in HBM so the
    # wrapper never re-materializes it, yet fc1 still runs at bf16 MXU rate
    # when the weights are bf16.
    x = x_ref[...].astype(w1_ref.dtype)
    # fc1: (tb, 784) @ (784, 128) on the MXU, f32 accumulate.
    h = jnp.dot(x, w1_ref[...], preferred_element_type=jnp.float32)
    # Epilogue (bias + LeakyReLU) in f32 (avoids bf16 VPU pack/unpack churn).
    h = h + b1_ref[...]
    h = jnp.where(h > 0, h, LEAKY_SLOPE * h)
    # fc2: (tb, 128) @ (128, 128); downcast only immediately before the dot.
    out = jnp.dot(h.astype(w2_ref.dtype), w2_ref[...],
                  preferred_element_type=jnp.float32)
    o_ref[...] = (out + b2_ref[...]).astype(o_ref.dtype)


def prepare_params(w1, b1, w2, b2, *, compute_dtype=jnp.float32):
    """One-time parameter prep, hoisted out of the per-call hot path.

    Transposes PyTorch (out, in) weights to (in, out), zero-pads the fc2 output
    dim 10 -> 128 (lane-dense stores), and casts matmul operands to
    `compute_dtype` (f32 or bf16).  No K padding: w1 stays (784, 128).
    Biases stay f32 (epilogue runs in f32).
    """
    w1t = w1.T.astype(compute_dtype)                                          # (784, 128)
    w2t = jnp.pad(w2.T, ((0, 0), (0, N_PAD - OUTPUT_DIM))).astype(compute_dtype)  # (128, 128)
    b1p = b1.reshape(1, HIDDEN_DIM).astype(jnp.float32)
    b2p = jnp.pad(b2, (0, N_PAD - OUTPUT_DIM)).reshape(1, N_PAD).astype(jnp.float32)
    return w1t, b1p, w2t, b2p


def _buffer_bytes(tb, n_xbuf, w_itemsize, out_itemsize):
    x_bytes = n_xbuf * tb * INPUT_DIM * 4                     # x tiles (f32 in HBM/VMEM)
    out_bytes = 2 * tb * N_PAD * out_itemsize                 # double-buffered output
    w_bytes = 2 * (INPUT_DIM * HIDDEN_DIM + HIDDEN_DIM * N_PAD) * w_itemsize
    b_bytes = 2 * (HIDDEN_DIM + N_PAD) * 4
    return x_bytes + out_bytes + w_bytes + b_bytes


def two_layer_net(x, params, *, block_b=2048, out_dtype=jnp.float32):
    """Fused forward pass: logits = LeakyReLU(x @ W1.T + b1) @ W2.T + b2.

    Args:
      x:        (B, 784) float32 activations. Fed to the kernel as-is (no HBM copy).
      params:   output of prepare_params().
      block_b:  max batch tile size (sweepable; 2048 f32 fits v7x VMEM comfortably).
      out_dtype: dtype of the kernel's (lane-padded) output block.
    Returns:
      (B, 10) logits in out_dtype.
    """
    w1p, b1p, w2p, b2p = params
    B, K = x.shape
    assert K == INPUT_DIM
    w_itemsize = jnp.dtype(w1p.dtype).itemsize
    out_itemsize = jnp.dtype(out_dtype).itemsize
    row_align = 16 if w1p.dtype == jnp.bfloat16 else 8

    # ---- batch tile selection --------------------------------------------
    if B <= _SMALL_B:
        # Latency path: one full-extent tile (block dim == array dim is always legal).
        tb = B
    elif B <= block_b:
        # Split into two tiles so both v7x TensorCores get work (harmless on v5e/v6e).
        tb = _round_up(pl.cdiv(B, 2), row_align)
    else:
        tb = _round_up(min(block_b, B), row_align)
    # Keep (triple-buffered x + double-buffered out + resident weights) under budget.
    while tb > row_align and _buffer_bytes(tb, 3, w_itemsize, out_itemsize) > _VMEM_BUDGET:
        tb = max(row_align, _round_up(tb // 2, row_align))

    grid_steps = pl.cdiv(B, tb)          # last block may be partial; Pallas masks it
    n_xbuf = 3 if grid_steps >= 3 else 2
    vmem_limit = min(
        max(_buffer_bytes(tb, n_xbuf, w_itemsize, out_itemsize) + (6 << 20), 16 << 20),
        _VMEM_LIMIT_CAP)

    x_spec_kwargs = {}
    if grid_steps >= 3:
        # Deeper buffering on the x stream: compute per tile is tiny vs. the DMA.
        x_spec_kwargs["pipeline_mode"] = pl.Buffered(3)

    flops = 2 * B * (INPUT_DIM * HIDDEN_DIM + HIDDEN_DIM * N_PAD)
    bytes_accessed = (x.size * x.dtype.itemsize
                      + (w1p.size + w2p.size) * w_itemsize
                      + (b1p.size + b2p.size) * 4
                      + B * N_PAD * out_itemsize)

    out = pl.pallas_call(
        _mlp_kernel,
        out_shape=jax.ShapeDtypeStruct((B, N_PAD), out_dtype),
        grid=(grid_steps,),
        in_specs=[
            # x: streamed over batch; last dim == full 784 -> no K padding, no HBM copy.
            pl.BlockSpec((tb, INPUT_DIM), lambda i: (i, 0), **x_spec_kwargs),
            # Weights/biases: same block every step -> stay VMEM-resident.
            pl.BlockSpec((INPUT_DIM, HIDDEN_DIM), lambda i: (0, 0)),
            pl.BlockSpec((1, HIDDEN_DIM), lambda i: (0, 0)),
            pl.BlockSpec((HIDDEN_DIM, N_PAD), lambda i: (0, 0)),
            pl.BlockSpec((1, N_PAD), lambda i: (0, 0)),
        ],
        out_specs=pl.BlockSpec((tb, N_PAD), lambda i: (i, 0)),
        compiler_params=pltpu.CompilerParams(
            # Independent batch tiles -> shard across both TCs on v7x
            # (harmless no-op on single-TC v5e/v6e).
            dimension_semantics=("parallel",),
            vmem_limit_bytes=int(vmem_limit)),
        cost_estimate=pl.CostEstimate(
            flops=flops, transcendentals=0, bytes_accessed=bytes_accessed),
    )(x, w1p, b1p, w2p, b2p)

    # Drop the zero-padded output lanes.
    return out[:, :OUTPUT_DIM]


def _init_params(key):
    """Deterministic init matching nn.Linear's default (uniform +-1/sqrt(fan_in))."""
    k1, k2, k3, k4 = jax.random.split(key, 4)
    bound1 = 1.0 / (INPUT_DIM ** 0.5)
    bound2 = 1.0 / (HIDDEN_DIM ** 0.5)
    w1 = jax.random.uniform(k1, (HIDDEN_DIM, INPUT_DIM), jnp.float32,
                            minval=-bound1, maxval=bound1)
    b1 = jax.random.uniform(k2, (HIDDEN_DIM,), jnp.float32,
                            minval=-bound1, maxval=bound1)
    w2 = jax.random.uniform(k3, (OUTPUT_DIM, HIDDEN_DIM), jnp.float32,
                            minval=-bound2, maxval=bound2)
    b2 = jax.random.uniform(k4, (OUTPUT_DIM,), jnp.float32,
                            minval=-bound2, maxval=bound2)
    return w1, b1, w2, b2


def _reference(x, w1, b1, w2, b2):
    # PyTorch semantics: x @ W1.T + b1, LeakyReLU(0.01), x @ W2.T + b2.
    h = x @ w1.T + b1
    h = jnp.where(h > 0, h, LEAKY_SLOPE * h)
    return h @ w2.T + b2


if __name__ == "__main__":
    key = jax.random.PRNGKey(0)
    k_x1, k_x2, k_p = jax.random.split(key, 3)

    w1, b1, w2, b2 = _init_params(k_p)
    params_f32 = prepare_params(w1, b1, w2, b2, compute_dtype=jnp.float32)
    params_bf16 = prepare_params(w1, b1, w2, b2, compute_dtype=jnp.bfloat16)

    # (1) Small batch: single full-extent tile (latency path).
    x_small = jax.random.normal(k_x1, (16, INPUT_DIM), jnp.float32)
    out_small = jax.block_until_ready(two_layer_net(x_small, params_f32))
    ref_small = _reference(x_small, w1, b1, w2, b2)
    assert out_small.shape == (16, OUTPUT_DIM)
    assert jnp.allclose(out_small, ref_small, atol=5e-4, rtol=5e-4)

    # (2) Multi-tile batch (grid=4) with a partial last block and Buffered(3) x stream.
    x_big = jax.random.normal(k_x2, (200, INPUT_DIM), jnp.float32)
    out_big = jax.block_until_ready(two_layer_net(x_big, params_f32, block_b=64))
    ref_big = _reference(x_big, w1, b1, w2, b2)
    assert out_big.shape == (200, OUTPUT_DIM)
    assert jnp.allclose(out_big, ref_big, atol=5e-4, rtol=5e-4)

    # (3) bf16-operand MXU path (in-kernel downcast, f32 accumulate/epilogue),
    #     two-tile split (both TCs on v7x), looser tolerance for bf16 inputs.
    out_bf16 = jax.block_until_ready(two_layer_net(x_big, params_bf16))
    assert out_bf16.shape == (200, OUTPUT_DIM)
    assert jnp.allclose(out_bf16, ref_big, atol=5e-2, rtol=5e-2)

    print("KERNEL_OK")
</pallas_src>

<mosaic_0001>
module attributes {stable_mosaic.version = 11 : i64} {
  func.func @_mlp_kernel(%arg0: i32, %arg1: memref<16x784xf32, #tpu.memory_space<vmem>>, %arg2: memref<784x128xf32, #tpu.memory_space<vmem>>, %arg3: memref<1x128xf32, #tpu.memory_space<vmem>>, %arg4: memref<128x128xf32, #tpu.memory_space<vmem>>, %arg5: memref<1x128xf32, #tpu.memory_space<vmem>>, %arg6: memref<16x128xf32, #tpu.memory_space<vmem>>) attributes {dimension_semantics = [#tpu.dimension_semantics<parallel>], iteration_bounds = array<i64: 1>, scalar_prefetch = 0 : i64, scratch_operands = 0 : i64, tpu.core_type = #tpu.core_type<tc>, window_params = [{transform_indices = @transform_0, window_bounds = array<i64: 16, 784>}, {pipeline_mode = #tpu.pipeline_mode<synchronous>, transform_indices = @transform_1, window_bounds = array<i64: 784, 128>}, {pipeline_mode = #tpu.pipeline_mode<synchronous>, transform_indices = @transform_2, window_bounds = array<i64: 1, 128>}, {pipeline_mode = #tpu.pipeline_mode<synchronous>, transform_indices = @transform_3, window_bounds = array<i64: 128, 128>}, {pipeline_mode = #tpu.pipeline_mode<synchronous>, transform_indices = @transform_4, window_bounds = array<i64: 1, 128>}, {transform_indices = @transform_5, window_bounds = array<i64: 16, 128>}]} {
    %c0 = arith.constant 0 : index
    %c0_0 = arith.constant 0 : index
    %0 = vector.load %arg1[%c0, %c0_0] : memref<16x784xf32, #tpu.memory_space<vmem>>, vector<16x784xf32>
    %c0_1 = arith.constant 0 : index
    %c0_2 = arith.constant 0 : index
    %1 = vector.load %arg2[%c0_1, %c0_2] : memref<784x128xf32, #tpu.memory_space<vmem>>, vector<784x128xf32>
    %cst = arith.constant dense<0.000000e+00> : vector<16x128xf32>
    %2 = tpu.matmul %0, %1, %cst {dimension_numbers = #tpu.dot_dimension_numbers<[1], [0], [0], [1], [0, 0, 1, 1], [], []>} : vector<16x784xf32>, vector<784x128xf32>, vector<16x128xf32> -> vector<16x128xf32>
    %c0_3 = arith.constant 0 : index
    %c0_4 = arith.constant 0 : index
    %3 = vector.load %arg3[%c0_3, %c0_4] : memref<1x128xf32, #tpu.memory_space<vmem>>, vector<1x128xf32>
    %4 = vector.broadcast %3 : vector<1x128xf32> to vector<16x128xf32>
    %5 = arith.addf %2, %4 : vector<16x128xf32>
    %cst_5 = arith.constant 0.000000e+00 : f32
    %6 = vector.broadcast %cst_5 : f32 to vector<16x128xf32>
    %7 = arith.cmpf ogt, %5, %6 : vector<16x128xf32>
    %cst_6 = arith.constant 0.00999999977 : f32
    %8 = vector.broadcast %cst_6 : f32 to vector<16x128xf32>
    %9 = arith.mulf %8, %5 : vector<16x128xf32>
    %10 = arith.select %7, %5, %9 : vector<16x128xi1>, vector<16x128xf32>
    %c0_7 = arith.constant 0 : index
    %c0_8 = arith.constant 0 : index
    %11 = vector.load %arg4[%c0_7, %c0_8] : memref<128x128xf32, #tpu.memory_space<vmem>>, vector<128x128xf32>
    %cst_9 = arith.constant dense<0.000000e+00> : vector<16x128xf32>
    %12 = tpu.matmul %10, %11, %cst_9 {dimension_numbers = #tpu.dot_dimension_numbers<[1], [0], [0], [1], [0, 0, 1, 1], [], []>} : vector<16x128xf32>, vector<128x128xf32>, vector<16x128xf32> -> vector<16x128xf32>
    %c0_10 = arith.constant 0 : index
    %c0_11 = arith.constant 0 : index
    %13 = vector.load %arg5[%c0_10, %c0_11] : memref<1x128xf32, #tpu.memory_space<vmem>>, vector<1x128xf32>
    %14 = vector.broadcast %13 : vector<1x128xf32> to vector<16x128xf32>
    %15 = arith.addf %12, %14 : vector<16x128xf32>
    %c0_12 = arith.constant 0 : index
    %c0_13 = arith.constant 0 : index
    %16 = vector.load %arg6[%c0_12, %c0_13] : memref<16x128xf32, #tpu.memory_space<vmem>>, vector<16x128xf32>
    tpu.vector_store %arg6[%c0_12, %c0_13], %15 {strides = array<i32>} : memref<16x128xf32, #tpu.memory_space<vmem>>, vector<16x128xf32>,
    return
  }
  func.func @transform_0(%arg0: i32) -> (i32, i32) {
    %c0_i32 = arith.constant 0 : i32
    %c0_i32_0 = arith.constant 0 : i32
    return %arg0, %c0_i32 : i32, i32
  }
  func.func @transform_1(%arg0: i32) -> (i32, i32) {
    %c0_i32 = arith.constant 0 : i32
    %c0_i32_0 = arith.constant 0 : i32
    %c0_i32_1 = arith.constant 0 : i32
    return %c0_i32, %c0_i32_0 : i32, i32
  }
  func.func @transform_2(%arg0: i32) -> (i32, i32) {
    %c0_i32 = arith.constant 0 : i32
    %c0_i32_0 = arith.constant 0 : i32
    %c0_i32_1 = arith.constant 0 : i32
    return %c0_i32, %c0_i32_0 : i32, i32
  }
  func.func @transform_3(%arg0: i32) -> (i32, i32) {
    %c0_i32 = arith.constant 0 : i32
    %c0_i32_0 = arith.constant 0 : i32
    %c0_i32_1 = arith.constant 0 : i32
    return %c0_i32, %c0_i32_0 : i32, i32
  }
  func.func @transform_4(%arg0: i32) -> (i32, i32) {
    %c0_i32 = arith.constant 0 : i32
    %c0_i32_0 = arith.constant 0 : i32
    %c0_i32_1 = arith.constant 0 : i32
    return %c0_i32, %c0_i32_0 : i32, i32
  }
  func.func @transform_5(%arg0: i32) -> (i32, i32) {
    %c0_i32 = arith.constant 0 : i32
    %c0_i32_0 = arith.constant 0 : i32
    return %arg0, %c0_i32 : i32, i32
  }
}

</mosaic_0001>

<bundles_post_ra>
// kernel: tpu_custom_call.1
= control target key start
LH: loop header
LB: loop body
LE: loop exit
PB: predicated region body
PF: predicated region fallthrough
CT: control target
= control target key end

     0   :  { %10 = vsyncpa [#allocation3], 0  ;;  %s953_s0 = inlined_call_operand.hbm [shape: f32[16,784], index: 0, kind: input, shape index: {}]   ;;  %s954_s1 = inlined_call_operand.hbm [shape: f32[784,128], index: 1, kind: input, shape index: {}]   ;;  %s955_s2 = inlined_call_operand.vmem [shape: f32[1,128], index: 2, kind: input, shape index: {}]   ;;  %s956_s3 = inlined_call_operand.hbm [shape: f32[128,128], index: 3, kind: input, shape index: {}]   ;;  %s957_s4 = inlined_call_operand.vmem [shape: f32[1,128], index: 4, kind: input, shape index: {}]   ;;  %s958_s5 = inlined_call_operand.hbm [shape: f32[16,128], index: 5, kind: output, shape index: {}]  }
   0x1   :  { %11 = vsyncpa [#allocation6], 0 }
   0x2   :  { %12 = vsyncpa [#allocation4], 0  ;;  %s888_s18 = smov [#allocation5]  }
   0x3   :  { %s30_s19 = sshll.u32 %s888_s18, 4  ;;  %s31_s19 = int_to_ptr.vmem [resolvable:$true] %s30_s19 }
   0x4   :  { %s810_s20 = scalar_lea.vmem %s31_s19, 12544  ;;  %p815_p1 = scmp.lt.s32.totalorder %s31_s19, %s31_s19 }
   0x5   :  { %p811_p0 = scmp.ne.s32.totalorder %s31_s19, %s810_s20  ;;  %p816_p2 = scmp.lt.s32.totalorder %s810_s20, %s810_s20 }
   0x7   :  { %p817_p3 = por %p816_p2, %p815_p1 }
   0x9   :  { %p818_p4 = pnand %p817_p3, %p811_p0 }
   0xb   :  { %821 = shalt.err (!%p818_p4)
}
   0xc   :  { %s889_s21 = smov 128   ;;  %s890_s22 = smov 8  }
   0xd   :  { %36 = dma.hbm_to_vmem [thread:$0]  %s954_s1, 12544, %s31_s19, [#allocation6], %s889_s21, %s889_s21, %s890_s22  }
   0xe   :  { %s891_s25 = smov [#allocation2]  }
   0xf   :  { %s18_s26 = sshll.u32 %s891_s25, 4  ;;  %s19_s26 = int_to_ptr.vmem [resolvable:$true] %s18_s26 }
  0x10   :  { %s830_s27 = scalar_lea.vmem %s19_s26, 1792  ;;  %p835_p6 = scmp.lt.s32.totalorder %s19_s26, %s19_s26 }
  0x11   :  { %p831_p5 = scmp.ne.s32.totalorder %s19_s26, %s830_s27  ;;  %p836_p7 = scmp.lt.s32.totalorder %s830_s27, %s830_s27 }
  0x13   :  { %p837_p8 = por %p836_p7, %p835_p6 }
  0x15   :  { %p838_p9 = pnand %p837_p8, %p831_p5 }
  0x17   :  { %841 = shalt.err (!%p838_p9)
}
  0x18   :  { %s892_s28 = smov 896   ;;  %s893_s29 = smov 56  }
  0x19   :  { %24 = dma.hbm_to_vmem [thread:$0]  %s953_s0, 1792, %s19_s26, [#allocation3], %s892_s28, %s892_s28, %s893_s29  }
  0x1a   :  { %s894_s7 = smov [#allocation7]  }
  0x1b   :  { %s44_s8 = sshll.u32 %s894_s7, 4  ;;  %s45_s8 = int_to_ptr.vmem [resolvable:$true] %s44_s8 }
  0x1c   :  { %s850_s1 = scalar_lea.vmem %s45_s8, 2048  ;;  %p855_p11 = scmp.lt.s32.totalorder %s45_s8, %s45_s8 }
  0x1d   :  { %p851_p10 = scmp.ne.s32.totalorder %s45_s8, %s850_s1  ;;  %p856_p12 = scmp.lt.s32.totalorder %s850_s1, %s850_s1 }
  0x1f   :  { %p857_p13 = por %p856_p12, %p855_p11 }
  0x21   :  { %p858_p0 = pnand %p857_p13, %p851_p10 }
  0x23   :  { %861 = shalt.err (!%p858_p0)
}
  0x24   :  { %50 = dma.hbm_to_vmem [thread:$0]  %s956_s3, 2048, %s45_s8, [#allocation6], %s889_s21, %s889_s21, %s890_s22  }
  0x25   :  { %882 = dma.done.wait [#allocation3], 1792  }
  0x26   :  { %883 = vsyncadd [#allocation3], 4294965504 }
  0x27   :  { %884 = dma.done.wait [#allocation6], 14592  }
  0x28   :  { %885 = vsyncadd [#allocation6], 4294952704  ;;  %v107_v0 = vld [vmem:[#allocation5 + $0xf8] sm:$0xff]  ;;  %v106_v2 = vld [vmem:[#allocation5 + $0xf0] sm:$0xff]  ;;  %vm181_vm0 = vcmask 130048   ;;  %s895_s12 = smov [#allocation8]  }
  0x29   :  { %v91_v1 = vld [vmem:[#allocation5 + $0x78] sm:$0xff]  ;;  %616 = vmatprep.subr.mxu0 %v107_v0  ;;  %v90_v4 = vld [vmem:[#allocation5 + $0x70] sm:$0xff]  ;;  %v105_v6 = vld [vmem:[#allocation5 + $0xe8] sm:$0xff]  ;;  %s599_s13 = sshll.u32 %s895_s12, 4  ;;  %s600_s13 = int_to_ptr.vmem [resolvable:$true] %s599_s13 }
  0x2a   :  { %v139_v3 = vld [vmem:[#allocation5 + $0x1f8] sm:$0xff]  ;;  %617 = vmatpush3.msra.mxu0 %v91_v1  ;;  %v138_v7 = vld [vmem:[#allocation5 + $0x1f0] sm:$0xff]  ;;  %v89_v8 = vld [vmem:[#allocation5 + $0x68] sm:$0xff]  ;;  %s862_s14 = scalar_lea.vmem %s600_s13, 256  ;;  %p867_p2 = scmp.lt.s32.totalorder %s600_s13, %s600_s13 }
  0x2b   :  { %v123_v5 = vld [vmem:[#allocation5 + $0x178] sm:$0xff]  ;;  %654 = vmatprep.subr.mxu1 %v139_v3  ;;  %618 = vmatprep.subr.mxu0 %v106_v2  ;;  %v122_v9 = vld [vmem:[#allocation5 + $0x170] sm:$0xff]  ;;  %v137_v10 = vld [vmem:[#allocation5 + $0x1e8] sm:$0xff]  ;;  %p863_p1 = scmp.ne.s32.totalorder %s600_s13, %s862_s14  ;;  %p868_p3 = scmp.lt.s32.totalorder %s862_s14, %s862_s14 }
  0x2c   :  { %655 = vmatpush3.msra.mxu1 %v123_v5  ;;  %619 = vmatpush3.msra.mxu0 %v90_v4  ;;  %v104_v11 = vld [vmem:[#allocation5 + $0xe0] sm:$0xff]  ;;  %v121_v12 = vld [vmem:[#allocation5 + $0x168] sm:$0xff]  ;;  %v103_v15 = vld [vmem:[#allocation5 + $0xd8] sm:$0xff] }
  0x2d   :  { %656 = vmatprep.subr.mxu1 %v138_v7  ;;  %620 = vmatprep.subr.mxu0 %v105_v6  ;;  %v88_v13 = vld [vmem:[#allocation5 + $0x60] sm:$0xff]  ;;  %v87_v17 = vld [vmem:[#allocation5 + $0x58] sm:$0xff]  ;;  %v102_v19 = vld [vmem:[#allocation5 + $0xd0] sm:$0xff]  ;;  %p869_p4 = por %p868_p3, %p867_p2 }
  0x2e   :  { %657 = vmatpush3.msra.mxu1 %v122_v9  ;;  %v136_v14 = vld [vmem:[#allocation5 + $0x1e0] sm:$0xff]  ;;  %621 = vmatpush3.msra.mxu0 %v89_v8  ;;  %v135_v18 = vld [vmem:[#allocation5 + $0x1d8] sm:$0xff]  ;;  %v86_v21 = vld [vmem:[#allocation5 + $0x50] sm:$0xff] }
  0x2f   :  { %658 = vmatprep.subr.mxu1 %v137_v10  ;;  %v120_v16 = vld [vmem:[#allocation5 + $0x160] sm:$0xff]  ;;  %622 = vmatprep.subr.mxu0 %v104_v11  ;;  %v119_v20 = vld [vmem:[#allocation5 + $0x158] sm:$0xff]  ;;  %v134_v22 = vld [vmem:[#allocation5 + $0x1d0] sm:$0xff]  ;;  %p870_p5 = pnand %p869_p4, %p863_p1 }
  0x30   :  { %659 = vmatpush3.msra.mxu1 %v121_v12  ;;  %623 = vmatpush3.msra.mxu0 %v88_v13  ;;  %v101_v23 = vld [vmem:[#allocation5 + $0xc8] sm:$0xff]  ;;  %v118_v24 = vld [vmem:[#allocation5 + $0x150] sm:$0xff]  ;;  %v100_v27 = vld [vmem:[#allocation5 + $0xc0] sm:$0xff] }
  0x31   :  { %660 = vmatprep.subr.mxu1 %v136_v14  ;;  %624 = vmatprep.subr.mxu0 %v103_v15  ;;  %v85_v25 = vld [vmem:[#allocation5 + $0x48] sm:$0xff]  ;;  %v84_v29 = vld [vmem:[#allocation5 + $0x40] sm:$0xff]  ;;  %v99_v31 = vld [vmem:[#allocation5 + $0xb8] sm:$0xff] }
  0x32   :  { %661 = vmatpush3.msra.mxu1 %v120_v16  ;;  %625 = vmatpush3.msra.mxu0 %v87_v17  ;;  %v133_v26 = vld [vmem:[#allocation5 + $0x1c8] sm:$0xff]  ;;  %v132_v30 = vld [vmem:[#allocation5 + $0x1c0] sm:$0xff]  ;;  %v83_v33 = vld [vmem:[#allocation5 + $0x38] sm:$0xff] }
  0x33   :  { %662 = vmatprep.subr.mxu1 %v135_v18  ;;  %626 = vmatprep.subr.mxu0 %v102_v19  ;;  %v117_v28 = vld [vmem:[#allocation5 + $0x148] sm:$0xff]  ;;  %v116_v32 = vld [vmem:[#allocation5 + $0x140] sm:$0xff]  ;;  %v131_v34 = vld [vmem:[#allocation5 + $0x1b8] sm:$0xff] }
  0x34   :  { %663 = vmatpush3.msra.mxu1 %v119_v20  ;;  %627 = vmatpush3.msra.mxu0 %v86_v21  ;;  %v98_v35 = vld [vmem:[#allocation5 + $0xb0] sm:$0xff]  ;;  %v115_v36 = vld [vmem:[#allocation5 + $0x138] sm:$0xff]  ;;  %v97_v39 = vld [vmem:[#allocation5 + $0xa8] sm:$0xff] }
  0x35   :  { %664 = vmatprep.subr.mxu1 %v134_v22  ;;  %628 = vmatprep.subr.mxu0 %v101_v23  ;;  %v82_v37 = vld [vmem:[#allocation5 + $0x30] sm:$0xff]  ;;  %v81_v41 = vld [vmem:[#allocation5 + $0x28] sm:$0xff]  ;;  %v96_v43 = vld [vmem:[#allocation5 + $0xa0] sm:$0xff] }
  0x36   :  { %665 = vmatpush3.msra.mxu1 %v118_v24  ;;  %629 = vmatpush3.msra.mxu0 %v85_v25  ;;  %v130_v38 = vld [vmem:[#allocation5 + $0x1b0] sm:$0xff]  ;;  %v129_v42 = vld [vmem:[#allocation5 + $0x1a8] sm:$0xff]  ;;  %v80_v45 = vld [vmem:[#allocation5 + $0x20] sm:$0xff] }
  0x37   :  { %666 = vmatprep.subr.mxu1 %v133_v26  ;;  %630 = vmatprep.subr.mxu0 %v100_v27  ;;  %v114_v40 = vld [vmem:[#allocation5 + $0x130] sm:$0xff]  ;;  %v113_v44 = vld [vmem:[#allocation5 + $0x128] sm:$0xff]  ;;  %v128_v46 = vld [vmem:[#allocation5 + $0x1a0] sm:$0xff] }
  0x38   :  { %667 = vmatpush3.msra.mxu1 %v117_v28  ;;  %631 = vmatpush3.msra.mxu0 %v84_v29  ;;  %v95_v47 = vld [vmem:[#allocation5 + $0x98] sm:$0xff]  ;;  %v112_v48 = vld [vmem:[#allocation5 + $0x120] sm:$0xff]  ;;  %v94_v51 = vld [vmem:[#allocation5 + $0x90] sm:$0xff] }
  0x39   :  { %668 = vmatprep.subr.mxu1 %v132_v30  ;;  %632 = vmatprep.subr.mxu0 %v99_v31  ;;  %v79_v49 = vld [vmem:[#allocation5 + $0x18] sm:$0xff]  ;;  %v78_v53 = vld [vmem:[#allocation5 + $0x10] sm:$0xff]  ;;  %v93_v55 = vld [vmem:[#allocation5 + $0x88] sm:$0xff] }
  0x3a   :  { %669 = vmatpush3.msra.mxu1 %v116_v32  ;;  %633 = vmatpush3.msra.mxu0 %v83_v33  ;;  %v127_v50 = vld [vmem:[#allocation5 + $0x198] sm:$0xff]  ;;  %v126_v54 = vld [vmem:[#allocation5 + $0x190] sm:$0xff]  ;;  %v77_v57 = vld [vmem:[#allocation5 + $0x8] sm:$0xff] }
  0x3b   :  { %670 = vmatprep.subr.mxu1 %v131_v34  ;;  %634 = vmatprep.subr.mxu0 %v98_v35  ;;  %v111_v52 = vld [vmem:[#allocation5 + $0x118] sm:$0xff]  ;;  %v110_v56 = vld [vmem:[#allocation5 + $0x110] sm:$0xff]  ;;  %v125_v58 = vld [vmem:[#allocation5 + $0x188] sm:$0xff] }
  0x3c   :  { %671 = vmatpush3.msra.mxu1 %v115_v36  ;;  %635 = vmatpush3.msra.mxu0 %v82_v37  ;;  %v92_v59 = vld [vmem:[#allocation5 + $0x80] sm:$0xff]  ;;  %v63_v60 = vld [vmem:[#allocation2 + $0x8] sm:$0xff]  ;;  %v109_v62 = vld [vmem:[#allocation5 + $0x108] sm:$0xff] }
  0x3d   :  { %672 = vmatprep.subr.mxu1 %v130_v38  ;;  %636 = vmatprep.subr.mxu0 %v97_v39  ;;  %v76_v61 = vld [vmem:[#allocation5] sm:$0xff]  ;;  %v62_v63 = vld [vmem:[#allocation2] sm:$0xff]  ;;  %v171_v1 = vld [vmem:[#allocation5 + $0x2f8] sm:$0xff] }
  0x3e   :  { %673 = vmatpush3.msra.mxu1 %v114_v40  ;;  %637 = vmatpush3.msra.mxu0 %v81_v41  ;;  %v124_v0 = vld [vmem:[#allocation5 + $0x180] sm:$0xff]  ;;  %v65_v3 = vld [vmem:[#allocation2 + $0x18] sm:$0xff]  ;;  %v155_v4 = vld [vmem:[#allocation5 + $0x278] sm:$0xff] }
  0x3f   :  { %674 = vmatprep.subr.mxu1 %v129_v42  ;;  %638 = vmatprep.subr.mxu0 %v96_v43  ;;  %v108_v2 = vld [vmem:[#allocation5 + $0x100] sm:$0xff]  ;;  %v170_v6 = vld [vmem:[#allocation5 + $0x2f0] sm:$0xff]  ;;  %v169_v9 = vld [vmem:[#allocation5 + $0x2e8] sm:$0xff] }
  0x40   :  { %675 = vmatpush3.msra.mxu1 %v113_v44  ;;  %639 = vmatpush3.msra.mxu0 %v80_v45  ;;  %v64_v5 = vld [vmem:[#allocation2 + $0x10] sm:$0xff]  ;;  %v154_v7 = vld [vmem:[#allocation5 + $0x270] sm:$0xff]  ;;  %v69_v10 = vld [vmem:[#allocation2 + $0x38] sm:$0xff] }
  0x41   :  { %676 = vmatprep.subr.mxu1 %v128_v46  ;;  %640 = vmatprep.subr.mxu0 %v95_v47  ;;  %v70_v8 = vld [vmem:[#allocation2 + $0x40] sm:$0xff]  ;;  %v153_v11 = vld [vmem:[#allocation5 + $0x268] sm:$0xff]  ;;  %v72_v12 = vld [vmem:[#allocation2 + $0x50] sm:$0xff] }
  0x42   :  { %677 = vmatpush3.msra.mxu1 %v112_v48  ;;  %641 = vmatpush3.msra.mxu0 %v79_v49  ;;  %v168_v13 = vld [vmem:[#allocation5 + $0x2e0] sm:$0xff]  ;;  %v71_v14 = vld [vmem:[#allocation2 + $0x48] sm:$0xff]  ;;  %v173_v16 = vld [vmem:[#allocation5 + $0x308] sm:$0xff] }
  0x43   :  { %678 = vmatprep.subr.mxu1 %v127_v50  ;;  %642 = vmatprep.subr.mxu0 %v94_v51  ;;  %v152_v15 = vld [vmem:[#allocation5 + $0x260] sm:$0xff]  ;;  %v167_v17 = vld [vmem:[#allocation5 + $0x2d8] sm:$0xff]  ;;  %v166_v20 = vld [vmem:[#allocation5 + $0x2d0] sm:$0xff] }
  0x44   :  { %679 = vmatpush3.msra.mxu1 %v111_v52  ;;  %643 = vmatpush3.msra.mxu0 %v78_v53  ;;  %v67_v18 = vld [vmem:[#allocation2 + $0x28] sm:$0xff]  ;;  %v172_v21 = vld [vmem:[#allocation5 + $0x300] sm:$0xff]  ;;  %v150_v22 = vld [vmem:[#allocation5 + $0x250] sm:$0xff] }
  0x45   :  { %680 = vmatprep.subr.mxu1 %v126_v54  ;;  %644 = vmatprep.subr.mxu0 %v93_v55  ;;  %v151_v19 = vld [vmem:[#allocation5 + $0x258] sm:$0xff]  ;;  %v165_v23 = vld [vmem:[#allocation5 + $0x2c8] sm:$0xff]  ;;  %v68_v24 = vld [vmem:[#allocation2 + $0x30] sm:$0xff] }
  0x46   :  { %681 = vmatpush3.msra.mxu1 %v110_v56  ;;  %645 = vmatpush3.msra.mxu0 %v77_v57  ;;  %v149_v25 = vld [vmem:[#allocation5 + $0x248] sm:$0xff]  ;;  %v75_v26 = vld [vmem:[#allocation2 + $0x68] sm:$0xff]  ;;  %v164_v27 = vld [vmem:[#allocation5 + $0x2c0] sm:$0xff] }
  0x47   :  { %682 = vmatprep.subr.mxu1 %v125_v58  ;;  %646 = vmatprep.subr.mxu0 %v92_v59  ;;  %v148_v28 = vld [vmem:[#allocation5 + $0x240] sm:$0xff]  ;;  %v163_v29 = vld [vmem:[#allocation5 + $0x2b8] sm:$0xff]  ;;  %v162_v31 = vld [vmem:[#allocation5 + $0x2b0] sm:$0xff] }
  0x48   :  { %252 = vmatprep.mubr.f32.mxu0 %v63_v60  ;;  %647 = vmatpush3.msra.mxu0 %v76_v61  ;;  %v147_v30 = vld [vmem:[#allocation5 + $0x238] sm:$0xff]  ;;  %v146_v32 = vld [vmem:[#allocation5 + $0x230] sm:$0xff]  ;;  %v161_v33 = vld [vmem:[#allocation5 + $0x2a8] sm:$0xff] }
  0x49   :  { %683 = vmatpush3.msra.mxu1 %v109_v62  ;;  %253 = vmatmul.mubr.f32.vlgmr.msra.gmra.mxu0 %v62_v63  ;;  %v145_v34 = vld [vmem:[#allocation5 + $0x228] sm:$0xff]  ;;  %v160_v35 = vld [vmem:[#allocation5 + $0x2a0] sm:$0xff]  ;;  %v159_v37 = vld [vmem:[#allocation5 + $0x298] sm:$0xff] }
  0x4a   :  { %684 = vmatprep.subr.mxu1 %v124_v0  ;;  %692 = vmatprep.subr.mxu0 %v171_v1  ;;  %v144_v36 = vld [vmem:[#allocation5 + $0x220] sm:$0xff]  ;;  %v143_v38 = vld [vmem:[#allocation5 + $0x218] sm:$0xff]  ;;  %v158_v39 = vld [vmem:[#allocation5 + $0x290] sm:$0xff] }
  0x4b   :  { %685 = vmatpush3.msra.mxu1 %v108_v2  ;;  %327 = vmatprep.mubr.f32.mxu1 %v65_v3  ;;  %v142_v40 = vld [vmem:[#allocation5 + $0x210] sm:$0xff]  ;;  %v157_v41 = vld [vmem:[#allocation5 + $0x288] sm:$0xff]  ;;  %v156_v43 = vld [vmem:[#allocation5 + $0x280] sm:$0xff] }
  0x4c   :  { %693 = vmatpush3.msra.mxu0 %v155_v4  ;;  %328 = vmatmul.mubr.f32.vlgmr.msra.gmra.mxu1 %v64_v5  ;;  %v141_v42 = vld [vmem:[#allocation5 + $0x208] sm:$0xff]  ;;  %v140_v44 = vld [vmem:[#allocation5 + $0x200] sm:$0xff]  ;;  %v66_v45 = vld [vmem:[#allocation2 + $0x20] sm:$0xff] }
  0x4d   :  { %694 = vmatprep.subr.mxu0 %v170_v6  ;;  %257 = vmatprep.mubr.f32.mxu0 %v70_v8  ;;  %v74_v46 = vld [vmem:[#allocation2 + $0x60] sm:$0xff]  ;;  %v73_v47 = vld [vmem:[#allocation2 + $0x58] sm:$0xff]  ;;  %v508_v49 = vld [vmem:[#allocation7 + $0x70] sm:$0xff] }
  0x4e   :  { %695 = vmatpush3.msra.mxu0 %v154_v7  ;;  %332 = vmatprep.mubr.f32.mxu1 %v72_v12  ;;  %v509_v48 = vld [vmem:[#allocation7 + $0x78] sm:$0xff]  ;;  %v507_v50 = vld [vmem:[#allocation7 + $0x68] sm:$0xff]  ;;  %v506_v51 = vld [vmem:[#allocation7 + $0x60] sm:$0xff] }
  0x4f   :  { %696 = vmatprep.subr.mxu0 %v169_v9  ;;  %258 = vmatmul.mubr.f32.gmra.mxu0 %v69_v10  ;;  %v505_v52 = vld [vmem:[#allocation7 + $0x58] sm:$0xff]  ;;  %v504_v53 = vld [vmem:[#allocation7 + $0x50] sm:$0xff]  ;;  %v503_v54 = vld [vmem:[#allocation7 + $0x48] sm:$0xff] }
  0x50   :  { %697 = vmatpush3.msra.mxu0 %v153_v11  ;;  %333 = vmatmul.mubr.f32.gmra.mxu1 %v71_v14  ;;  %v502_v55 = vld [vmem:[#allocation7 + $0x40] sm:$0xff]  ;;  %v501_v56 = vld [vmem:[#allocation7 + $0x38] sm:$0xff]  ;;  %v500_v57 = vld [vmem:[#allocation7 + $0x30] sm:$0xff] }
  0x51   :  { %698 = vmatprep.subr.mxu0 %v168_v13  ;;  %752 = vmatprep.subr.mxu1 %v173_v16  ;;  %v499_v58 = vld [vmem:[#allocation7 + $0x28] sm:$0xff]  ;;  %v498_v59 = vld [vmem:[#allocation7 + $0x20] sm:$0xff]  ;;  %v497_v60 = vld [vmem:[#allocation7 + $0x18] sm:$0xff] }
  0x52   :  { %699 = vmatpush3.msra.mxu0 %v152_v15  ;;  %402 = vmatprep.mubr.f32.mxu0 %v67_v18  ;;  %v496_v61 = vld [vmem:[#allocation7 + $0x10] sm:$0xff]  ;;  %v495_v62 = vld [vmem:[#allocation7 + $0x8] sm:$0xff]  ;;  %v494_v63 = vld [vmem:[#allocation7] sm:$0xff] }
  0x53   :  { %700 = vmatprep.subr.mxu0 %v167_v17  ;;  %753 = vmatpush3.msra.mxu1 %v173_v16  ;;  %v612_v7 = vld [vmem:[%s955_s2] ss:$0 sm:$0xff] }
  0x54   :  { %701 = vmatpush3.msra.mxu0 %v151_v19  ;;  %754 = vmatprep.subr.mxu1 %v172_v21 }
  0x55   :  { %702 = vmatprep.subr.mxu0 %v166_v20  ;;  %755 = vmatpush3.msra.mxu1 %v172_v21 }
  0x56   :  { %703 = vmatpush3.msra.mxu0 %v150_v22  ;;  %756 = vmatprep.mubr.msk.f32.mxu1 %vm181_vm0, %v68_v24 }
  0x57   :  { %704 = vmatprep.subr.mxu0 %v165_v23  ;;  %757 = vmatmul.mubr.msk.f32.vlgmr.msra.gmra.mxu1 %vm181_vm0, %v75_v26 }
  0x58   :  { %705 = vmatpush3.msra.mxu0 %v149_v25  ;;  %759 = vmatprep.subr.mxu1 %v509_v48 }
  0x59   :  { %706 = vmatprep.subr.mxu0 %v164_v27  ;;  %760 = vmatpush3.msra.mxu1 %v509_v48 }
  0x5a   :  { %707 = vmatpush3.msra.mxu0 %v148_v28  ;;  %761 = vmatprep.subr.mxu1 %v508_v49 }
  0x5b   :  { %708 = vmatprep.subr.mxu0 %v163_v29  ;;  %762 = vmatpush3.msra.mxu1 %v508_v49 }
  0x5c   :  { %709 = vmatpush3.msra.mxu0 %v147_v30  ;;  %763 = vmatprep.subr.mxu1 %v507_v50 }
  0x5d   :  { %710 = vmatprep.subr.mxu0 %v162_v31  ;;  %764 = vmatpush3.msra.mxu1 %v507_v50 }
  0x5e   :  { %711 = vmatpush3.msra.mxu0 %v146_v32  ;;  %765 = vmatprep.subr.mxu1 %v506_v51 }
  0x5f   :  { %712 = vmatprep.subr.mxu0 %v161_v33  ;;  %766 = vmatpush3.msra.mxu1 %v506_v51  ;;  %v615_v33 = vld [vmem:[%s957_s4] ss:$0 sm:$0xff] }
  0x60   :  { %713 = vmatpush3.msra.mxu0 %v145_v34  ;;  %767 = vmatprep.subr.mxu1 %v505_v52 }
  0x61   :  { %714 = vmatprep.subr.mxu0 %v160_v35  ;;  %768 = vmatpush3.msra.mxu1 %v505_v52 }
  0x62   :  { %715 = vmatpush3.msra.mxu0 %v144_v36  ;;  %769 = vmatprep.subr.mxu1 %v504_v53 }
  0x63   :  { %716 = vmatprep.subr.mxu0 %v159_v37  ;;  %770 = vmatpush3.msra.mxu1 %v504_v53 }
  0x64   :  { %717 = vmatpush3.msra.mxu0 %v143_v38  ;;  %771 = vmatprep.subr.mxu1 %v503_v54 }
  0x65   :  { %718 = vmatprep.subr.mxu0 %v158_v39  ;;  %772 = vmatpush3.msra.mxu1 %v503_v54 }
  0x66   :  { %719 = vmatpush3.msra.mxu0 %v142_v40  ;;  %773 = vmatprep.subr.mxu1 %v502_v55 }
  0x67   :  { %720 = vmatprep.subr.mxu0 %v157_v41  ;;  %774 = vmatpush3.msra.mxu1 %v502_v55 }
  0x68   :  { %721 = vmatpush3.msra.mxu0 %v141_v42  ;;  %775 = vmatprep.subr.mxu1 %v501_v56 }
  0x69   :  { %722 = vmatprep.subr.mxu0 %v156_v43  ;;  %776 = vmatpush3.msra.mxu1 %v501_v56 }
  0x6a   :  { %723 = vmatpush3.msra.mxu0 %v140_v44  ;;  %777 = vmatprep.subr.mxu1 %v500_v57 }
  0x6b   :  { %403 = vmatmul.mubr.f32.vlgmr.msra.gmra.mxu0 %v66_v45  ;;  %778 = vmatpush3.msra.mxu1 %v500_v57 }
  0x6c   :  { %407 = vmatprep.mubr.f32.mxu0 %v74_v46  ;;  %779 = vmatprep.subr.mxu1 %v499_v58 }
  0x6d   :  { %780 = vmatpush3.msra.mxu1 %v499_v58 }
  0x6e   :  { %781 = vmatprep.subr.mxu1 %v498_v59 }
  0x6f   :  { %408 = vmatmul.mubr.f32.gmra.mxu0 %v73_v47  ;;  %782 = vmatpush3.msra.mxu1 %v498_v59 }
  0x70   :  { %783 = vmatprep.subr.mxu1 %v497_v60 }
  0x71   :  { %784 = vmatpush3.msra.mxu1 %v497_v60 }
  0x72   :  { %785 = vmatprep.subr.mxu1 %v496_v61 }
  0x73   :  { %786 = vmatpush3.msra.mxu1 %v496_v61 }
  0x74   :  { %787 = vmatprep.subr.mxu1 %v495_v62 }
  0x75   :  { %788 = vmatpush3.msra.mxu1 %v495_v62 }
  0x76   :  { %789 = vmatprep.subr.mxu1 %v494_v63 }
  0x77   :  { %790 = vmatpush3.msra.mxu1 %v494_v63 }
 0x109   :  { %v648_v0 = vpop.f32.mrf.mxu0 }
 0x10b   :  { %v649_v2 = vpop.f32.mrf.mxu0 }
 0x10c   :  { %v686_v1 = vpop.f32.mrf.mxu1  ;;  %v650_v6 = vadd.f32 %v649_v2, %v648_v0 }
 0x10e   :  { %v687_v3 = vpop.f32.mrf.mxu1  ;;  %v255_v10 = vadd.f32 %v650_v6, %v612_v7 }
 0x10f   :  { %v651_v4 = vpop.f32.mrf.mxu0  ;;  %v688_v11 = vadd.f32 %v687_v3, %v686_v1 }
 0x110   :  { %v689_v5 = vpop.f32.mrf.mxu1 }
 0x111   :  { %v652_v8 = vpop.f32.mrf.mxu0  ;;  %v330_v16 = vadd.f32 %v688_v11, %v255_v10 }
 0x112   :  { %v690_v9 = vpop.f32.mrf.mxu1  ;;  %v653_v12 = vadd.f32 %v652_v8, %v651_v4 }
 0x113   :  { %v691_v18 = vadd.f32 %v690_v9, %v689_v5 }
 0x114   :  { %v260_v17 = vadd.f32 %v653_v12, %v612_v7 }
 0x116   :  { %v335_v24 = vadd.f32 %v691_v18, %v260_v17 }
 0x117   :  { %v758_v14 = vpop.f32.mrf.mxu1 }
 0x119   :  { %v479_v21 = vpop.f32.mrf.mxu1 }
 0x12b   :  { %v724_v13 = vpop.f32.mrf.mxu0 }
 0x12d   :  { %v725_v15 = vpop.f32.mrf.mxu0 }
 0x12e   :  { %v726_v19 = vadd.f32 %v725_v15, %v724_v13 }
 0x12f   :  { %v727_v20 = vpop.f32.mrf.mxu0 }
 0x130   :  { %v405_v22 = vadd.f32 %v726_v19, %v330_v16 }
 0x131   :  { %v728_v23 = vpop.f32.mrf.mxu0 }
 0x132   :  { %v729_v25 = vadd.f32 %v728_v23, %v727_v20  ;;  %v480_v26 = vadd.f32 %v479_v21, %v405_v22 }
 0x134   :  { %v410_v27 = vadd.f32 %v729_v25, %v335_v24  ;;  %v490_v28 = vmul.f32 0.01, %v480_v26  ;;  %vm488_vm1 = vcmp.gt.f32.partialorder %v480_v26, 0.0 }
 0x136   :  { %v485_v29 = vadd.f32 %v758_v14, %v410_v27  ;;  %v492_v30 = vsel %vm488_vm1, %v480_v26, %v490_v28 }
 0x137   :  { %791 = vmatprep.mubr.f32.mxu1 %v492_v30 }
 0x138   :  { %vm489_vm2 = vcmp.gt.f32.partialorder %v485_v29, 0.0  ;;  %v491_v31 = vmul.f32 0.01, %v485_v29 }
 0x13a   :  { %v493_v32 = vsel %vm489_vm2, %v485_v29, %v491_v31 }
 0x13b   :  { %792 = vmatmul.mubr.f32.vlgmr.msra.gmra.mxu1 %v493_v32 }
 0x1fb   :  { %v793_v34 = vpop.f32.mrf.mxu1 }
 0x1fc   :  { %v589_v35 = vadd.f32 %v793_v34, %v615_v33 }
 0x1fd   :  { %v583_v36 = vpop.f32.mrf.mxu1 }
 0x1fe   :  { %593 = vst [vmem:[#allocation8 + $0x8] sm:$0xff] %v589_v35  ;;  %v584_v37 = vadd.f32 %v615_v33, %v583_v36 }
 0x200   :  { %592 = vst [vmem:[#allocation8] sm:$0xff] %v584_v37 }
 0x201   :  { %873 = shalt.err (!%p870_p5)
}
 0x202   :  { %605 = dma.vmem_to_hbm [thread:$0]  %s600_s13, 256, %s958_s5, [#allocation4], %s889_s21, %s889_s21, %s890_s22  }
 0x203   :  { %886 = dma.done.wait [#allocation4], 256  }
 0x204   :  { %887 = vsyncadd [#allocation4], 4294967040 }
 0x205   :  { %609 = vsyncpa [#allocation3], 1 }
 0x206   :  { %610 = vsyncpa [#allocation6], 1 }
 0x207   :  { %611 = vsyncpa [#allocation4], 1 }

</bundles_post_ra>
